<compile_context>
chip_gen: v7x
topology: tpu7x:2x2x1
jax: 0.10.0
libtpu: 0.0.40
codegen_flags: <defaults>
</compile_context>

<pallas_src>
import functools
import math

import jax
import jax.numpy as jnp
from jax import lax
from jax.experimental import pallas as pl
from jax.experimental.pallas import tpu as pltpu

_SQRT_HALF = 1.0 / math.sqrt(2.0)
_LN_EPS = 1e-5


def _round_up(v, m):
    return ((v + m - 1) // m) * m


def _pad_to(a, shape):
    pads = [(0, t - s) for s, t in zip(a.shape, shape)]
    if any(p[1] for p in pads):
        return jnp.pad(a, pads)
    return a


def _vmem_budget_bytes():
    """Generation-aware scoped-VMEM budget (v7x: 64 MiB/TC, v5e/v6e: 128 MiB)."""
    try:
        cap = pltpu.get_tpu_info().vmem_capacity_bytes
    except Exception:
        return 48 * 1024 * 1024                 # conservative: valid on every generation
    if cap <= 64 * 1024 * 1024:                 # v7x: leave internal-scratch headroom
        return min(cap - 8 * 1024 * 1024, 56 * 1024 * 1024)
    return 110 * 1024 * 1024                    # v5e / v6e


def _mlp_kernel(x_ref, w1_ref, b1_ref, g_ref, be_ref, w2_ref, b2_ref, o_ref,
                h_ref, acc_ref, *, inv_dh, dh_chunk, num_chunks, approx_gelu):
    # ---- Linear 1 (MXU): bf16 operands, f32 accumulation --------------------
    h = jnp.dot(x_ref[...], w1_ref[...], preferred_element_type=jnp.float32)
    h = h + b1_ref[...]
    h_ref[...] = h                               # park h in VMEM; re-read per chunk

    # ---- LayerNorm statistics (single pass; padded hidden cols are exactly 0,
    #      so they do not perturb the sums; divide by the *un-padded* width) ---
    s1 = jnp.sum(h, axis=-1, keepdims=True)
    s2 = jnp.sum(h * h, axis=-1, keepdims=True)
    mean = s1 * inv_dh
    var = s2 * inv_dh - mean * mean              # NOTE: single-pass; fine at these scales
    rstd = lax.rsqrt(var + _LN_EPS)

    # ---- Chunked normalize -> GELU -> second matmul (accumulate) ------------
    acc_ref[...] = jnp.broadcast_to(b2_ref[...], acc_ref.shape)

    def chunk_step(off):
        hc = h_ref[:, pl.ds(off, dh_chunk)]                       # (tm, dh_chunk) f32
        gc = g_ref[:, pl.ds(off, dh_chunk)]                       # (1, dh_chunk) f32
        bc = be_ref[:, pl.ds(off, dh_chunk)]
        hn = (hc - mean) * rstd * gc + bc
        if approx_gelu:
            ge = jax.nn.gelu(hn, approximate=True)                # tanh -> EUP slot
        else:
            ge = 0.5 * hn * (1.0 + lax.erf(hn * _SQRT_HALF))      # exact (torch default)
        wc = w2_ref[pl.ds(off, dh_chunk), :]                      # (dh_chunk, Dp_out) bf16
        acc_ref[...] += jnp.dot(ge.astype(w2_ref.dtype), wc,
                                preferred_element_type=jnp.float32)

    if num_chunks <= 8:
        for c in range(num_chunks):              # short loop: fully unrolled at trace time
            chunk_step(c * dh_chunk)
    else:
        def body(c, carry):
            chunk_step(pl.multiple_of(c * dh_chunk, dh_chunk))
            return carry
        lax.fori_loop(0, num_chunks, body, 0)

    # Dropout with p = 0.0 (eval semantics) is the identity.
    o_ref[...] = acc_ref[...].astype(o_ref.dtype)


def prepare_params(params, *, matmul_dtype=jnp.bfloat16):
    """Pad (lane-align to 128) and cast the weights ONCE, outside the per-call hot path."""
    w1, b1 = params["w1"], params["b1"]
    gamma, beta = params["gamma"], params["beta"]
    w2, b2 = params["w2"], params["b2"]
    Din, Dh = w1.shape
    Dout = w2.shape[1]
    Dp_in, Dp_h, Dp_out = (_round_up(d, 128) for d in (Din, Dh, Dout))
    prepared = {
        "w1": _pad_to(w1, (Dp_in, Dp_h)).astype(matmul_dtype),
        "b1": _pad_to(b1.reshape(1, -1), (1, Dp_h)).astype(jnp.float32),
        "gamma": _pad_to(gamma.reshape(1, -1), (1, Dp_h)).astype(jnp.float32),
        "beta": _pad_to(beta.reshape(1, -1), (1, Dp_h)).astype(jnp.float32),
        "w2": _pad_to(w2, (Dp_h, Dp_out)).astype(matmul_dtype),
        "b2": _pad_to(b2.reshape(1, -1), (1, Dp_out)).astype(jnp.float32),
    }
    meta = dict(Din=Din, Dh=Dh, Dout=Dout, Dp_in=Dp_in, Dp_h=Dp_h, Dp_out=Dp_out,
                matmul_dtype=matmul_dtype)
    return prepared, meta


def mlp_pallas(x, prepared, meta, *, block_rows=512, approximate_gelu=False,
               vmem_limit_bytes=None):
    """Fused MLP forward.  x: (B, S, dim_in).  Weights stored as (in, out)."""
    B, S, Din = x.shape
    assert Din == meta["Din"], "x feature dim does not match prepared params"
    Dh, Dout = meta["Dh"], meta["Dout"]
    Dp_in, Dp_h, Dp_out = meta["Dp_in"], meta["Dp_h"], meta["Dp_out"]
    mm_dtype = meta["matmul_dtype"]
    N = B * S
    out_dtype = x.dtype

    if vmem_limit_bytes is None:
        vmem_limit_bytes = _vmem_budget_bytes()

    w_item = jnp.dtype(mm_dtype).itemsize
    x_item = jnp.dtype(mm_dtype).itemsize
    out_item = jnp.dtype(out_dtype).itemsize

    # ---- static residency check (Buffered(1) -> single copy of each weight) ----
    resident = (Dp_in * Dp_h + Dp_h * Dp_out) * w_item + (3 * Dp_h + Dp_h + Dp_out) * 4
    if resident > 0.85 * vmem_limit_bytes:
        # TODO(synk): streamed-weight fallback (Dout column tiles / Din K-tiles) for
        # weights that do not fit VMEM residency; not needed at these sizes.
        raise ValueError(
            f"MLP weights ({resident / 2**20:.1f} MiB padded) exceed the "
            f"{vmem_limit_bytes / 2**20:.1f} MiB VMEM budget for whole-weight residency.")

    # ---- row tile: MXU-aligned (256), >= 2 tiles when N allows, VMEM-checked ----
    if N <= 256:
        tm = _round_up(N, 8)
    else:
        tm = _round_up(min(block_rows, N), 256)
        while tm > 256 and -(-N // tm) < 2:
            tm -= 256

    def _tile_bytes(t):
        return (2 * t * Dp_in * x_item            # x tile (double-buffered)
                + 2 * t * Dp_out * out_item       # out tile (double-buffered)
                + t * Dp_h * 4                    # h scratch (f32)
                + t * Dp_out * 4)                 # accumulator scratch (f32)

    while tm > 8 and resident + _tile_bytes(tm) > 0.9 * vmem_limit_bytes:
        tm = max(8, _round_up(tm // 2, 8))        # may lose 256-alignment; fitting wins

    Np = _round_up(N, tm)

    # ---- hidden-dim chunk size for the LN/GELU/matmul-2 stage ----
    if Dp_h % 512 == 0:
        dh_chunk = 512
    elif Dp_h % 256 == 0:
        dh_chunk = 256
    else:
        dh_chunk = 128
    dh_chunk = min(dh_chunk, Dp_h)
    num_chunks = Dp_h // dh_chunk

    # x padding / cast is the only per-call prep (skipped when already aligned).
    x2 = _pad_to(x.reshape(N, Din).astype(mm_dtype), (Np, Dp_in))

    grid = (Np // tm,)
    row_spec = lambda shape: pl.BlockSpec(shape, lambda i: (i, 0))
    # Constant index_map: never re-fetched across the grid; Buffered(1) keeps a single
    # VMEM copy instead of the default double buffer.
    const_spec = lambda shape: pl.BlockSpec(shape, lambda i: (0, 0),
                                            pipeline_mode=pl.Buffered(1))

    cost = pl.CostEstimate(
        flops=2 * N * Din * Dh + 2 * N * Dh * Dout,
        transcendentals=N * Dh,  # erf/tanh in GELU
        bytes_accessed=(N * Din * x_item + Din * Dh * w_item + Dh * Dout * w_item
                        + (3 * Dh + Dout) * 4 + N * Dout * out_item),
    )

    out2 = pl.pallas_call(
        functools.partial(_mlp_kernel, inv_dh=float(1.0 / Dh),
                          dh_chunk=dh_chunk, num_chunks=num_chunks,
                          approx_gelu=approximate_gelu),
        out_shape=jax.ShapeDtypeStruct((Np, Dp_out), out_dtype),
        grid=grid,
        in_specs=[
            row_spec((tm, Dp_in)),        # x: streamed row tiles (double-buffered)
            const_spec((Dp_in, Dp_h)),    # w1: resident, single buffer
            const_spec((1, Dp_h)),        # b1
            const_spec((1, Dp_h)),        # gamma
            const_spec((1, Dp_h)),        # beta
            const_spec((Dp_h, Dp_out)),   # w2: resident, single buffer
            const_spec((1, Dp_out)),      # b2
        ],
        out_specs=row_spec((tm, Dp_out)),
        scratch_shapes=[pltpu.VMEM((tm, Dp_h), jnp.float32),    # h
                        pltpu.VMEM((tm, Dp_out), jnp.float32)], # accumulator
        compiler_params=pltpu.CompilerParams(
            dimension_semantics=("parallel",),   # independent row tiles (megacore)
            vmem_limit_bytes=int(vmem_limit_bytes),
        ),
        cost_estimate=cost,
    )(x2, prepared["w1"], prepared["b1"], prepared["gamma"], prepared["beta"],
      prepared["w2"], prepared["b2"])

    return out2[:N, :Dout].reshape(B, S, Dout)


def init_params(key, dim_in, dim_out=None, scale_ratio=4, dtype=jnp.float32):
    """Deterministic init mimicking nn.Linear / nn.LayerNorm default shapes."""
    if dim_out is None:
        dim_out = dim_in
    scaled = max(1, int(dim_in * scale_ratio))
    k1, k2, k3, k4 = jax.random.split(key, 4)
    lim1 = 1.0 / math.sqrt(dim_in)
    lim2 = 1.0 / math.sqrt(scaled)
    # Stored as (in, out) so the kernel does x @ W directly.
    w1 = jax.random.uniform(k1, (dim_in, scaled), dtype, -lim1, lim1)
    b1 = jax.random.uniform(k2, (1, scaled), dtype, -lim1, lim1)
    gamma = jnp.ones((1, scaled), dtype)
    beta = jnp.zeros((1, scaled), dtype)
    w2 = jax.random.uniform(k3, (scaled, dim_out), dtype, -lim2, lim2)
    b2 = jax.random.uniform(k4, (1, dim_out), dtype, -lim2, lim2)
    return {"w1": w1, "b1": b1, "gamma": gamma, "beta": beta, "w2": w2, "b2": b2}


def mlp_ref(x, p, mm_dtype=None):
    """Pure-JAX reference.  mm_dtype (optional) mirrors the kernel's matmul-operand dtype."""
    def cast(a):
        return a if mm_dtype is None else a.astype(mm_dtype).astype(jnp.float32)
    hp = jax.lax.Precision.HIGHEST
    h = jnp.dot(cast(x), cast(p["w1"]), precision=hp) + p["b1"][0]
    mean = jnp.mean(h, axis=-1, keepdims=True)
    var = jnp.mean(jnp.square(h - mean), axis=-1, keepdims=True)
    hn = (h - mean) / jnp.sqrt(var + _LN_EPS) * p["gamma"][0] + p["beta"][0]
    ge = 0.5 * hn * (1.0 + lax.erf(hn * _SQRT_HALF))
    return jnp.dot(cast(ge), cast(p["w2"]), precision=hp) + p["b2"][0]


if __name__ == "__main__":
    key = jax.random.PRNGKey(0)
    kx, kp = jax.random.split(key)

    B, S, dim_in = 2, 8, 32          # scaled_dim = 32 * 4 = 128, dim_out = 32
    x = jax.random.normal(kx, (B, S, dim_in), jnp.float32)
    params = init_params(kp, dim_in)

    # Pad + bf16-cast the weights once (hoisted out of the per-call hot path).
    prepared, meta = prepare_params(params, matmul_dtype=jnp.bfloat16)

    out = mlp_pallas(x, prepared, meta)
    jax.block_until_ready(out)

    assert out.shape == (B, S, dim_in)
    # Tight check vs. a reference that mirrors the kernel's bf16 matmul-operand casts.
    ref_bf16 = mlp_ref(x, params, mm_dtype=jnp.bfloat16)
    assert jnp.allclose(out, ref_bf16, atol=2e-3, rtol=2e-3)
    # Looser check vs. the pure-f32 reference (bf16 MXU operands, f32 accumulation).
    ref_f32 = mlp_ref(x, params)
    assert jnp.allclose(out, ref_f32, atol=5e-2, rtol=5e-2)

    print("KERNEL_OK")
</pallas_src>

<mosaic_0001>
module attributes {stable_mosaic.version = 11 : i64} {
  func.func @_mlp_kernel(%arg0: i32, %arg1: memref<16x128xbf16, #tpu.memory_space<vmem>>, %arg2: memref<128x128xbf16, #tpu.memory_space<vmem>>, %arg3: memref<1x128xf32, #tpu.memory_space<vmem>>, %arg4: memref<1x128xf32, #tpu.memory_space<vmem>>, %arg5: memref<1x128xf32, #tpu.memory_space<vmem>>, %arg6: memref<128x128xbf16, #tpu.memory_space<vmem>>, %arg7: memref<1x128xf32, #tpu.memory_space<vmem>>, %arg8: memref<16x128xf32, #tpu.memory_space<vmem>>, %arg9: memref<16x128xf32, #tpu.memory_space<vmem>>, %arg10: memref<16x128xf32, #tpu.memory_space<vmem>>) attributes {dimension_semantics = [#tpu.dimension_semantics<parallel>], iteration_bounds = array<i64: 1>, scalar_prefetch = 0 : i64, scratch_operands = 2 : i64, tpu.core_type = #tpu.core_type<tc>, window_params = [{transform_indices = @transform_0, window_bounds = array<i64: 16, 128>}, {pipeline_mode = #tpu.pipeline_mode<synchronous>, transform_indices = @transform_1, window_bounds = array<i64: 128, 128>}, {pipeline_mode = #tpu.pipeline_mode<synchronous>, transform_indices = @transform_2, window_bounds = array<i64: 1, 128>}, {pipeline_mode = #tpu.pipeline_mode<synchronous>, transform_indices = @transform_3, window_bounds = array<i64: 1, 128>}, {pipeline_mode = #tpu.pipeline_mode<synchronous>, transform_indices = @transform_4, window_bounds = array<i64: 1, 128>}, {pipeline_mode = #tpu.pipeline_mode<synchronous>, transform_indices = @transform_5, window_bounds = array<i64: 128, 128>}, {pipeline_mode = #tpu.pipeline_mode<synchronous>, transform_indices = @transform_6, window_bounds = array<i64: 1, 128>}, {transform_indices = @transform_7, window_bounds = array<i64: 16, 128>}]} {
    %c0 = arith.constant 0 : index
    %c0_0 = arith.constant 0 : index
    %0 = vector.load %arg1[%c0, %c0_0] : memref<16x128xbf16, #tpu.memory_space<vmem>>, vector<16x128xbf16>
    %c0_1 = arith.constant 0 : index
    %c0_2 = arith.constant 0 : index
    %1 = vector.load %arg2[%c0_1, %c0_2] : memref<128x128xbf16, #tpu.memory_space<vmem>>, vector<128x128xbf16>
    %cst = arith.constant dense<0.000000e+00> : vector<16x128xf32>
    %2 = tpu.matmul %0, %1, %cst {dimension_numbers = #tpu.dot_dimension_numbers<[1], [0], [0], [1], [0, 0, 1, 1], [], []>} : vector<16x128xbf16>, vector<128x128xbf16>, vector<16x128xf32> -> vector<16x128xf32>
    %c0_3 = arith.constant 0 : index
    %c0_4 = arith.constant 0 : index
    %3 = vector.load %arg3[%c0_3, %c0_4] : memref<1x128xf32, #tpu.memory_space<vmem>>, vector<1x128xf32>
    %4 = vector.broadcast %3 : vector<1x128xf32> to vector<16x128xf32>
    %5 = arith.addf %2, %4 : vector<16x128xf32>
    %c0_5 = arith.constant 0 : index
    %c0_6 = arith.constant 0 : index
    %6 = vector.load %arg9[%c0_5, %c0_6] : memref<16x128xf32, #tpu.memory_space<vmem>>, vector<16x128xf32>
    tpu.vector_store %arg9[%c0_5, %c0_6], %5 {strides = array<i32>} : memref<16x128xf32, #tpu.memory_space<vmem>>, vector<16x128xf32>,
    %cst_7 = arith.constant dense<0.000000e+00> : vector<16xf32>
    %7 = vector.multi_reduction <add>, %5, %cst_7 [1] : vector<16x128xf32> to vector<16xf32>
    %8 = vector.shape_cast %7 : vector<16xf32> to vector<16x1xf32>
    %9 = arith.mulf %5, %5 : vector<16x128xf32>
    %cst_8 = arith.constant dense<0.000000e+00> : vector<16xf32>
    %10 = vector.multi_reduction <add>, %9, %cst_8 [1] : vector<16x128xf32> to vector<16xf32>
    %11 = vector.shape_cast %10 : vector<16xf32> to vector<16x1xf32>
    %cst_9 = arith.constant 7.812500e-03 : f32
    %12 = vector.broadcast %cst_9 : f32 to vector<16x1xf32>
    %13 = arith.mulf %8, %12 : vector<16x1xf32>
    %cst_10 = arith.constant 7.812500e-03 : f32
    %14 = vector.broadcast %cst_10 : f32 to vector<16x1xf32>
    %15 = arith.mulf %11, %14 : vector<16x1xf32>
    %16 = arith.mulf %13, %13 : vector<16x1xf32>
    %17 = arith.subf %15, %16 : vector<16x1xf32>
    %cst_11 = arith.constant 9.99999974E-6 : f32
    %18 = vector.broadcast %cst_11 : f32 to vector<16x1xf32>
    %19 = arith.addf %17, %18 : vector<16x1xf32>
    %20 = math.rsqrt %19 : vector<16x1xf32>
    %c0_12 = arith.constant 0 : index
    %c0_13 = arith.constant 0 : index
    %21 = vector.load %arg7[%c0_12, %c0_13] : memref<1x128xf32, #tpu.memory_space<vmem>>, vector<1x128xf32>
    %22 = vector.shape_cast %21 : vector<1x128xf32> to vector<1x128xf32>
    %23 = vector.broadcast %22 : vector<1x128xf32> to vector<16x128xf32>
    %c0_14 = arith.constant 0 : index
    %c0_15 = arith.constant 0 : index
    %24 = vector.load %arg10[%c0_14, %c0_15] : memref<16x128xf32, #tpu.memory_space<vmem>>, vector<16x128xf32>
    tpu.vector_store %arg10[%c0_14, %c0_15], %23 {strides = array<i32>} : memref<16x128xf32, #tpu.memory_space<vmem>>, vector<16x128xf32>,
    %c0_16 = arith.constant 0 : index
    %c0_17 = arith.constant 0 : index
    %25 = vector.load %arg9[%c0_16, %c0_17] : memref<16x128xf32, #tpu.memory_space<vmem>>, vector<16x128xf32>
    %c0_18 = arith.constant 0 : index
    %c0_19 = arith.constant 0 : index
    %26 = vector.load %arg4[%c0_18, %c0_19] : memref<1x128xf32, #tpu.memory_space<vmem>>, vector<1x128xf32>
    %c0_20 = arith.constant 0 : index
    %c0_21 = arith.constant 0 : index
    %27 = vector.load %arg5[%c0_20, %c0_21] : memref<1x128xf32, #tpu.memory_space<vmem>>, vector<1x128xf32>
    %28 = vector.broadcast %13 : vector<16x1xf32> to vector<16x128xf32>
    %29 = arith.subf %25, %28 : vector<16x128xf32>
    %30 = vector.broadcast %20 : vector<16x1xf32> to vector<16x128xf32>
    %31 = arith.mulf %29, %30 : vector<16x128xf32>
    %32 = vector.broadcast %26 : vector<1x128xf32> to vector<16x128xf32>
    %33 = arith.mulf %31, %32 : vector<16x128xf32>
    %34 = vector.broadcast %27 : vector<1x128xf32> to vector<16x128xf32>
    %35 = arith.addf %33, %34 : vector<16x128xf32>
    %cst_22 = arith.constant 5.000000e-01 : f32
    %36 = vector.broadcast %cst_22 : f32 to vector<16x128xf32>
    %37 = arith.mulf %36, %35 : vector<16x128xf32>
    %cst_23 = arith.constant 0.707106769 : f32
    %38 = vector.broadcast %cst_23 : f32 to vector<16x128xf32>
    %39 = arith.mulf %35, %38 : vector<16x128xf32>
    %40 = math.erf %39 : vector<16x128xf32>
    %cst_24 = arith.constant 1.000000e+00 : f32
    %41 = vector.broadcast %cst_24 : f32 to vector<16x128xf32>
    %42 = arith.addf %41, %40 : vector<16x128xf32>
    %43 = arith.mulf %37, %42 : vector<16x128xf32>
    %c0_25 = arith.constant 0 : index
    %c0_26 = arith.constant 0 : index
    %44 = vector.load %arg6[%c0_25, %c0_26] : memref<128x128xbf16, #tpu.memory_space<vmem>>, vector<128x128xbf16>
    %c0_27 = arith.constant 0 : index
    %c0_28 = arith.constant 0 : index
    %45 = vector.load %arg10[%c0_27, %c0_28] : memref<16x128xf32, #tpu.memory_space<vmem>>, vector<16x128xf32>
    %46 = arith.truncf %43 : vector<16x128xf32> to vector<16x128xbf16>
    %cst_29 = arith.constant dense<0.000000e+00> : vector<16x128xf32>
    %47 = tpu.matmul %46, %44, %cst_29 {dimension_numbers = #tpu.dot_dimension_numbers<[1], [0], [0], [1], [0, 0, 1, 1], [], []>} : vector<16x128xbf16>, vector<128x128xbf16>, vector<16x128xf32> -> vector<16x128xf32>
    %48 = arith.addf %45, %47 : vector<16x128xf32>
    %c0_30 = arith.constant 0 : index
    %c0_31 = arith.constant 0 : index
    %49 = vector.load %arg10[%c0_30, %c0_31] : memref<16x128xf32, #tpu.memory_space<vmem>>, vector<16x128xf32>
    tpu.vector_store %arg10[%c0_30, %c0_31], %48 {strides = array<i32>} : memref<16x128xf32, #tpu.memory_space<vmem>>, vector<16x128xf32>,
    %c0_32 = arith.constant 0 : index
    %c0_33 = arith.constant 0 : index
    %50 = vector.load %arg10[%c0_32, %c0_33] : memref<16x128xf32, #tpu.memory_space<vmem>>, vector<16x128xf32>
    %c0_34 = arith.constant 0 : index
    %c0_35 = arith.constant 0 : index
    %51 = vector.load %arg8[%c0_34, %c0_35] : memref<16x128xf32, #tpu.memory_space<vmem>>, vector<16x128xf32>
    tpu.vector_store %arg8[%c0_34, %c0_35], %50 {strides = array<i32>} : memref<16x128xf32, #tpu.memory_space<vmem>>, vector<16x128xf32>,
    return
  }
  func.func @transform_0(%arg0: i32) -> (i32, i32) {
    %c0_i32 = arith.constant 0 : i32
    %c0_i32_0 = arith.constant 0 : i32
    return %arg0, %c0_i32 : i32, i32
  }
  func.func @transform_1(%arg0: i32) -> (i32, i32) {
    %c0_i32 = arith.constant 0 : i32
    %c0_i32_0 = arith.constant 0 : i32
    %c0_i32_1 = arith.constant 0 : i32
    return %c0_i32, %c0_i32_0 : i32, i32
  }
  func.func @transform_2(%arg0: i32) -> (i32, i32) {
    %c0_i32 = arith.constant 0 : i32
    %c0_i32_0 = arith.constant 0 : i32
    %c0_i32_1 = arith.constant 0 : i32
    return %c0_i32, %c0_i32_0 : i32, i32
  }
  func.func @transform_3(%arg0: i32) -> (i32, i32) {
    %c0_i32 = arith.constant 0 : i32
    %c0_i32_0 = arith.constant 0 : i32
    %c0_i32_1 = arith.constant 0 : i32
    return %c0_i32, %c0_i32_0 : i32, i32
  }
  func.func @transform_4(%arg0: i32) -> (i32, i32) {
    %c0_i32 = arith.constant 0 : i32
    %c0_i32_0 = arith.constant 0 : i32
    %c0_i32_1 = arith.constant 0 : i32
    return %c0_i32, %c0_i32_0 : i32, i32
  }
  func.func @transform_5(%arg0: i32) -> (i32, i32) {
    %c0_i32 = arith.constant 0 : i32
    %c0_i32_0 = arith.constant 0 : i32
    %c0_i32_1 = arith.constant 0 : i32
    return %c0_i32, %c0_i32_0 : i32, i32
  }
  func.func @transform_6(%arg0: i32) -> (i32, i32) {
    %c0_i32 = arith.constant 0 : i32
    %c0_i32_0 = arith.constant 0 : i32
    %c0_i32_1 = arith.constant 0 : i32
    return %c0_i32, %c0_i32_0 : i32, i32
  }
  func.func @transform_7(%arg0: i32) -> (i32, i32) {
    %c0_i32 = arith.constant 0 : i32
    %c0_i32_0 = arith.constant 0 : i32
    return %arg0, %c0_i32 : i32, i32
  }
}

</mosaic_0001>

<bundles_post_ra>
// kernel: tpu_custom_call.1
= control target key start
LH: loop header
LB: loop body
LE: loop exit
PB: predicated region body
PF: predicated region fallthrough
CT: control target
= control target key end

     0   :  { %12 = vsyncpa [#allocation5], 0  ;;  %s742_s0 = inlined_call_operand.hbm [shape: bf16[16,128], index: 0, kind: input, shape index: {}]   ;;  %s743_s1 = inlined_call_operand.hbm [shape: bf16[128,128], index: 1, kind: input, shape index: {}]   ;;  %s744_s2 = inlined_call_operand.vmem [shape: f32[1,128], index: 2, kind: input, shape index: {}]   ;;  %s745_s3 = inlined_call_operand.vmem [shape: f32[1,128], index: 3, kind: input, shape index: {}]   ;;  %s746_s4 = inlined_call_operand.vmem [shape: f32[1,128], index: 4, kind: input, shape index: {}]   ;;  %s747_s5 = inlined_call_operand.hbm [shape: bf16[128,128], index: 5, kind: input, shape index: {}]   ;;  %s748_s6 = inlined_call_operand.vmem [shape: f32[1,128], index: 6, kind: input, shape index: {}]   ;;  %s749_s7 = inlined_call_operand.hbm [shape: f32[16,128], index: 7, kind: output, shape index: {}]  }
   0x1   :  { %13 = vsyncpa [#allocation8], 0 }
   0x2   :  { %14 = vsyncpa [#allocation6], 0  ;;  %s598_s24 = smov [#allocation7]   ;;  %s599_s26 = smov [#allocation4]  }
   0x3   :  { %s32_s25 = sshll.u32 %s598_s24, 4  ;;  %s20_s27 = sshll.u32 %s599_s26, 4  ;;  %s33_s25 = int_to_ptr.vmem [resolvable:$true] %s32_s25  ;;  %s648_s27 = int_to_ptr.vmem [resolvable:$true] %s20_s27 }
   0x4   :  { %s504_s30 = scalar_lea.hbm %s743_s1, 1024 }
   0x5   :  { %p505_p0 = scmp.ne.s32.totalorder %s743_s1, %s504_s30  ;;  %p508_p1 = scmp.lt.u32.totalorder %s504_s30, %s743_s1 }
   0x7   :  { %p510_p2 = pnand %p508_p1, %p505_p0 }
   0x9   :  { %513 = shalt.err (!%p510_p2)
}
   0xa   :  { %s514_s12 = scalar_lea.vmem %s33_s25, 1024  ;;  %p519_p4 = scmp.lt.s32.totalorder %s33_s25, %s33_s25 }
   0xb   :  { %p515_p3 = scmp.ne.s32.totalorder %s33_s25, %s514_s12  ;;  %p520_p5 = scmp.lt.s32.totalorder %s514_s12, %s514_s12 }
   0xd   :  { %p521_p6 = por %p520_p5, %p519_p4 }
   0xf   :  { %p522_p7 = pnand %p521_p6, %p515_p3 }
  0x11   :  { %525 = shalt.err (!%p522_p7)
}
  0x12   :  { %s600_s13 = smov 64   ;;  %s601_s14 = smov 4  }
  0x13   :  { %38 = dma.hbm_to_vmem [thread:$0]  %s743_s1, 1024, %s33_s25, [#allocation8], %s600_s13, %s600_s13, %s601_s14  }
  0x14   :  { %s526_s19 = scalar_lea.hbm %s742_s0, 128 }
  0x15   :  { %p527_p8 = scmp.ne.s32.totalorder %s742_s0, %s526_s19  ;;  %p530_p9 = scmp.lt.u32.totalorder %s526_s19, %s742_s0 }
  0x17   :  { %p532_p10 = pnand %p530_p9, %p527_p8 }
  0x19   :  { %535 = shalt.err (!%p532_p10)
}
  0x1a   :  { %s536_s24 = scalar_lea.vmem %s648_s27, 128  ;;  %p541_p12 = scmp.lt.s32.totalorder %s648_s27, %s648_s27 }
  0x1b   :  { %p537_p11 = scmp.ne.s32.totalorder %s648_s27, %s536_s24  ;;  %p542_p13 = scmp.lt.s32.totalorder %s536_s24, %s536_s24 }
  0x1d   :  { %p543_p0 = por %p542_p13, %p541_p12 }
  0x1f   :  { %p544_p1 = pnand %p543_p0, %p537_p11 }
  0x21   :  { %547 = shalt.err (!%p544_p1)
}
  0x22   :  { %26 = dma.hbm_to_vmem [thread:$0]  %s742_s0, 128, %s648_s27, [#allocation5], %s600_s13, %s600_s13, %s601_s14  }
  0x23   :  { %s602_s26 = smov [#allocation9]   ;;  %s548_s8 = scalar_lea.hbm %s747_s5, 1024 }
  0x24   :  { %s50_s28 = sshll.u32 %s602_s26, 4  ;;  %p549_p2 = scmp.ne.s32.totalorder %s747_s5, %s548_s8  ;;  %s51_s28 = int_to_ptr.vmem [resolvable:$true] %s50_s28 }
  0x25   :  { %p552_p3 = scmp.lt.u32.totalorder %s548_s8, %s747_s5 }
  0x27   :  { %p554_p4 = pnand %p552_p3, %p549_p2 }
  0x29   :  { %557 = shalt.err (!%p554_p4)
}
  0x2a   :  { %s558_s15 = scalar_lea.vmem %s51_s28, 1024  ;;  %p563_p6 = scmp.lt.s32.totalorder %s51_s28, %s51_s28 }
  0x2b   :  { %p559_p5 = scmp.ne.s32.totalorder %s51_s28, %s558_s15  ;;  %p564_p7 = scmp.lt.s32.totalorder %s558_s15, %s558_s15 }
  0x2d   :  { %p565_p8 = por %p564_p7, %p563_p6 }
  0x2f   :  { %p566_p9 = pnand %p565_p8, %p559_p5 }
  0x31   :  { %569 = shalt.err (!%p566_p9)
}
  0x32   :  { %56 = dma.hbm_to_vmem [thread:$0]  %s747_s5, 1024, %s51_s28, [#allocation8], %s600_s13, %s600_s13, %s601_s14  }
  0x33   :  { %592 = dma.done.wait [#allocation5], 128  }
  0x34   :  { %593 = vsyncadd [#allocation5], 4294967168 }
  0x35   :  { %594 = dma.done.wait [#allocation8], 2048  }
  0x36   :  { %595 = vsyncadd [#allocation8], 4294965248  ;;  %v603_v0 = vmov 0.0   ;;  %vm604_vm0 = vmmov 0   ;;  %v479_v1 = vld [vmem:[#allocation7] sm:$0xff]   ;;  %v480_v2 = vld [vmem:[#allocation7 + $0x8] sm:$0xff]  }
  0x37   :  { %429 = vmatprep.subr.bf16.mxu0 %v603_v0  ;;  %445 = vmatprep.mubr.msk.bf16.mxu0 %vm604_vm0, %v603_v0  ;;  %v481_v3 = vld [vmem:[#allocation7 + $0x10] sm:$0xff]   ;;  %v482_v4 = vld [vmem:[#allocation7 + $0x18] sm:$0xff]   ;;  %v483_v5 = vld [vmem:[#allocation7 + $0x20] sm:$0xff]   ;;  %s605_s18 = smov [#allocation10]  }
  0x38   :  { %449 = vmatprep.subr.bf16.mxu1 %v603_v0  ;;  %465 = vmatprep.mubr.msk.bf16.mxu1 %vm604_vm0, %v603_v0  ;;  %v484_v6 = vld [vmem:[#allocation7 + $0x28] sm:$0xff]   ;;  %v485_v7 = vld [vmem:[#allocation7 + $0x30] sm:$0xff]   ;;  %v486_v8 = vld [vmem:[#allocation7 + $0x38] sm:$0xff]   ;;  %s377_s19 = sshll.u32 %s605_s18, 4  ;;  %s378_s19 = int_to_ptr.vmem [resolvable:$true] %s377_s19 }
  0x39   :  { %430 = vmatpush3.bf16.msra.mxu0 %v479_v1  ;;  %v487_v9 = vld [vmem:[#allocation4] sm:$0xff]   ;;  %v488_v19 = vld [vmem:[#allocation9] sm:$0xff]   ;;  %v489_v20 = vld [vmem:[#allocation9 + $0x8] sm:$0xff]   ;;  %s570_s20 = scalar_lea.vmem %s378_s19, 256  ;;  %p575_p11 = scmp.lt.s32.totalorder %s378_s19, %s378_s19 }
  0x3a   :  { %431 = vmatprep.subr.bf16.mxu0 %v603_v0  ;;  %v390_v10 = vld [vmem:[%s744_s2] ss:$0 sm:$0xff]  ;;  %450 = vmatpush3.bf16.msra.mxu1 %v488_v19  ;;  %v490_v21 = vld [vmem:[#allocation9 + $0x10] sm:$0xff]   ;;  %v492_v23 = vld [vmem:[#allocation9 + $0x20] sm:$0xff]   ;;  %p571_p10 = scmp.ne.s32.totalorder %s378_s19, %s570_s20  ;;  %p576_p12 = scmp.lt.s32.totalorder %s570_s20, %s570_s20 }
  0x3b   :  { %451 = vmatprep.subr.bf16.mxu1 %v603_v0  ;;  %v491_v22 = vld [vmem:[#allocation9 + $0x18] sm:$0xff]   ;;  %v493_v24 = vld [vmem:[#allocation9 + $0x28] sm:$0xff]   ;;  %v494_v25 = vld [vmem:[#allocation9 + $0x30] sm:$0xff]  }
  0x3c   :  { %v495_v26 = vld [vmem:[#allocation9 + $0x38] sm:$0xff]   ;;  %p577_p13 = por %p576_p12, %p575_p11 }
  0x3d   :  { %432 = vmatpush3.bf16.msra.mxu0 %v480_v2  ;;  %v401_v43 = vld [vmem:[%s745_s3] ss:$0 sm:$0xff] }
  0x3e   :  { %433 = vmatprep.subr.bf16.mxu0 %v603_v0  ;;  %452 = vmatpush3.bf16.msra.mxu1 %v489_v20  ;;  %v402_v45 = vld [vmem:[%s746_s4] ss:$0 sm:$0xff]  ;;  %p578_p0 = pnand %p577_p13, %p571_p10 }
  0x3f   :  { %453 = vmatprep.subr.bf16.mxu1 %v603_v0 }
  0x41   :  { %434 = vmatpush3.bf16.msra.mxu0 %v481_v3 }
  0x42   :  { %435 = vmatprep.subr.bf16.mxu0 %v603_v0  ;;  %454 = vmatpush3.bf16.msra.mxu1 %v490_v21 }
  0x43   :  { %455 = vmatprep.subr.bf16.mxu1 %v603_v0 }
  0x45   :  { %436 = vmatpush3.bf16.msra.mxu0 %v482_v4 }
  0x46   :  { %437 = vmatprep.subr.bf16.mxu0 %v603_v0  ;;  %456 = vmatpush3.bf16.msra.mxu1 %v491_v22 }
  0x47   :  { %457 = vmatprep.subr.bf16.mxu1 %v603_v0 }
  0x49   :  { %438 = vmatpush3.bf16.msra.mxu0 %v483_v5 }
  0x4a   :  { %439 = vmatprep.subr.bf16.mxu0 %v603_v0  ;;  %458 = vmatpush3.bf16.msra.mxu1 %v492_v23 }
  0x4b   :  { %459 = vmatprep.subr.bf16.mxu1 %v603_v0 }
  0x4d   :  { %440 = vmatpush3.bf16.msra.mxu0 %v484_v6 }
  0x4e   :  { %441 = vmatprep.subr.bf16.mxu0 %v603_v0  ;;  %460 = vmatpush3.bf16.msra.mxu1 %v493_v24 }
  0x4f   :  { %461 = vmatprep.subr.bf16.mxu1 %v603_v0 }
  0x51   :  { %442 = vmatpush3.bf16.msra.mxu0 %v485_v7 }
  0x52   :  { %443 = vmatprep.subr.bf16.mxu0 %v603_v0  ;;  %462 = vmatpush3.bf16.msra.mxu1 %v494_v25 }
  0x53   :  { %463 = vmatprep.subr.bf16.mxu1 %v603_v0  ;;  %v400_v0 = vld [vmem:[%s748_s6] ss:$0 sm:$0xff] }
  0x55   :  { %444 = vmatpush3.bf16.msra.mxu0 %v486_v8 }
  0x56   :  { %464 = vmatpush3.bf16.msra.mxu1 %v495_v26 }
  0x58   :  { %446 = vmatmul.mubr.bf16.vlgmr.msra.gmra.mrb[0].mxu0 %v487_v9 }
 0x12b   :  { %v182_v11 = vpop.f32.mrb[0].mxu0 }
 0x12c   :  { %v183_v12 = vadd.f32 %v390_v10, %v182_v11  ;;  %v447_v13 = vpop.f32.mrb[1].mxu0 }
 0x12d   :  { %v185_v14 = vpop.f32.mrb[2].mxu0 }
 0x12e   :  { %v186_v15 = vadd.f32 %v390_v10, %v185_v14  ;;  %191 = vadd.xlane.f32.xlu0 %v183_v12  ;;  %v448_v16 = vpop.f32.mrb[3].mxu0  ;;  %v195_v17 = vmul.f32 %v183_v12, %v183_v12 }
 0x130   :  { %197 = vadd.xlane.f32.xlu1 %v195_v17  ;;  %v196_v18 = vmul.f32 %v186_v15, %v186_v15 }
 0x132   :  { %193 = vadd.xlane.f32.xlu0 %v186_v15 }
 0x134   :  { %199 = vadd.xlane.f32.xlu1 %v196_v18 }
 0x1bb   :  { %v192_v27 = vpop.xlane.xlu0 %191 }
 0x1bc   :  { %v201_v28 = vmul.f32 0.0078125, %v192_v27 }
 0x1bd   :  { %v198_v29 = vpop.xlane.xlu1 %197 }
 0x1be   :  { %v205_v30 = vmul.f32 %v201_v28, %v201_v28  ;;  %v203_v31 = vmul.f32 0.0078125, %v198_v29  ;;  %v226_v41 = vsub.f32 %v183_v12, %v201_v28 }
 0x1bf   :  { %v194_v32 = vpop.xlane.xlu0 %193 }
 0x1c0   :  { %v207_v33 = vsub.f32 %v203_v31, %v205_v30  ;;  %v202_v34 = vmul.f32 0.0078125, %v194_v32 }
 0x1c1   :  { %v200_v35 = vpop.xlane.xlu1 %199 }
 0x1c2   :  { %v209_v36 = vadd.f32 1e-05, %v207_v33  ;;  %v206_v37 = vmul.f32 %v202_v34, %v202_v34  ;;  %v204_v38 = vmul.f32 0.0078125, %v200_v35  ;;  %v227_v46 = vsub.f32 %v186_v15, %v202_v34 }
 0x1c4   :  { %496 = vrsqrt.f32 %v209_v36  ;;  %v208_v39 = vsub.f32 %v204_v38, %v206_v37 }
 0x1c6   :  { %v210_v40 = vadd.f32 1e-05, %v208_v39 }
 0x1c8   :  { %498 = vrsqrt.f32 %v210_v40 }
 0x1ce   :  { %v497_v42 = vpop.eup %496 }
 0x1cf   :  { %v228_v44 = vmul.f32 %v497_v42, %v226_v41 }
 0x1d1   :  { %v236_v47 = vmul.f32 %v401_v43, %v228_v44 }
 0x1d2   :  { %v499_v48 = vpop.eup %498 }
 0x1d3   :  { %v229_v49 = vmul.f32 %v499_v48, %v227_v46  ;;  %v244_v50 = vadd.f32 %v402_v45, %v236_v47 }
 0x1d5   :  { %v237_v51 = vmul.f32 %v401_v43, %v229_v49  ;;  %v248_v52 = vmul.f32 0.70710677, %v244_v50  ;;  %v246_v58 = vmul.f32 0.5, %v244_v50 }
 0x1d7   :  { %v245_v53 = vadd.f32 %v402_v45, %v237_v51  ;;  %500 = verf.f32 %v248_v52 }
 0x1d9   :  { %v249_v54 = vmul.f32 0.70710677, %v245_v53  ;;  %v247_v59 = vmul.f32 0.5, %v245_v53 }
 0x1db   :  { %502 = verf.f32 %v249_v54 }
 0x1e1   :  { %v501_v55 = vpop.eup %500 }
 0x1e2   :  { %v252_v56 = vadd.f32 1.0, %v501_v55 }
 0x1e4   :  { %v254_v61 = vmul.f32 %v252_v56, %v246_v58 }
 0x1e5   :  { %v503_v57 = vpop.eup %502 }
 0x1e6   :  { %v253_v60 = vadd.f32 1.0, %v503_v57 }
 0x1e8   :  { %v255_v62 = vmul.f32 %v253_v60, %v247_v59 }
 0x1ea   :  { %v274_v63 = vpack.c.bf16 %v255_v62, %v254_v61 }
 0x1ec   :  { %466 = vmatmul.mubr.bf16.vlgmr.msra.gmra.mrb[0].mxu1 %v274_v63 }
 0x2bf   :  { %v357_v1 = vpop.f32.mrb[0].mxu1 }
 0x2c0   :  { %v364_v2 = vadd.f32 %v400_v0, %v357_v1  ;;  %v467_v3 = vpop.f32.mrb[1].mxu1 }
 0x2c1   :  { %v360_v4 = vpop.f32.mrb[2].mxu1 }
 0x2c2   :  { %370 = vst [vmem:[#allocation10] sm:$0xff] %v364_v2  ;;  %v365_v5 = vadd.f32 %v400_v0, %v360_v4  ;;  %v468_v6 = vpop.f32.mrb[3].mxu1 }
 0x2c4   :  { %371 = vst [vmem:[#allocation10 + $0x8] sm:$0xff] %v365_v5 }
 0x2c5   :  { %581 = shalt.err (!%p578_p0)
}
 0x2c6   :  { %s582_s22 = scalar_lea.hbm %s749_s7, 256 }
 0x2c7   :  { %p583_p1 = scmp.ne.s32.totalorder %s749_s7, %s582_s22  ;;  %p586_p2 = scmp.lt.u32.totalorder %s582_s22, %s749_s7 }
 0x2c9   :  { %p588_p3 = pnand %p586_p2, %p583_p1 }
 0x2cb   :  { %591 = shalt.err (!%p588_p3)
}
 0x2cc   :  { %s606_s26 = smov 128   ;;  %s607_s28 = smov 8  }
 0x2cd   :  { %383 = dma.vmem_to_hbm [thread:$0]  %s378_s19, 256, %s749_s7, [#allocation6], %s606_s26, %s606_s26, %s607_s28  }
 0x2ce   :  { %596 = dma.done.wait [#allocation6], 256  }
 0x2cf   :  { %597 = vsyncadd [#allocation6], 4294967040 }
 0x2d0   :  { %387 = vsyncpa [#allocation5], 1 }
 0x2d1   :  { %388 = vsyncpa [#allocation8], 1 }
 0x2d2   :  { %389 = vsyncpa [#allocation6], 1 }

</bundles_post_ra>
